<compile_context>
chip_gen: v5e
topology: v5e:2x2
jax: 0.10.0
libtpu: 0.0.40
codegen_flags: <defaults>
</compile_context>

<pallas_src>
import math

import jax
import jax.numpy as jnp
from jax.experimental import pallas as pl
from jax.experimental.pallas import tpu as pltpu

LN_EPS = 1e-5


def _round_up(n, m):
    return ((n + m - 1) // m) * m


def _ln_project(parts, w_ref, wsum_ref, bias_ref, o_ref, n_features):
    """Fused LayerNorm(4C)+Linear epilogue shared by both kernel flavours.

    parts: 2-D (rows, k_i) slabs (native dtype) whose feature-axis concat is
    the (rows, 4C) merged 2x2 window in the kernel's permuted feature order.
    The unfold permutation and LN affine are pre-folded into w/wsum/bias:
        out = rstd * (x @ (gamma*W) - mean * colsum(gamma*W)) + beta @ W
    """
    inv_n = 1.0 / float(n_features)

    # Single-pass statistics, f32 accumulation (the only f32 cast in-kernel).
    s1 = None
    s2 = None
    for part in parts:
        pf = part.astype(jnp.float32)
        a = jnp.sum(pf, axis=-1, keepdims=True)
        b = jnp.sum(pf * pf, axis=-1, keepdims=True)
        s1 = a if s1 is None else s1 + a
        s2 = b if s2 is None else s2 + b
    mean = s1 * inv_n
    var = jnp.maximum(s2 * inv_n - mean * mean, 0.0)   # guard tiny negatives
    rstd = jax.lax.rsqrt(var + LN_EPS)

    # MXU runs on the native-dtype tiles (bf16 stays bf16), f32 accumulation.
    mm = None
    k0 = 0
    for part in parts:
        k1 = k0 + part.shape[-1]
        d = jnp.dot(part, w_ref[k0:k1, :], preferred_element_type=jnp.float32)
        mm = d if mm is None else mm + d
        k0 = k1

    out = rstd * (mm - mean * wsum_ref[...]) + bias_ref[...]   # all f32
    o_ref[...] = out.astype(o_ref.dtype)


def _merged_rows_kernel(x_ref, w_ref, wsum_ref, bias_ref, o_ref):
    # x_ref: (TM, 4C) lane-dense merged-window slab (tiny-C path).
    _ln_project([x_ref[...]], w_ref, wsum_ref, bias_ref, o_ref, x_ref.shape[-1])


def _split_rows_kernel(top_ref, bot_ref, w_ref, wsum_ref, bias_ref, o_ref):
    # top_ref/bot_ref: (R, Wh, 2C) pixel rows (2i, *) / (2i+1, *), delivered
    # directly by the BlockSpecs (no in-kernel slice of a middle axis).
    r, wh, two_c = top_ref.shape
    rows = r * wh
    top = top_ref[...].reshape(rows, two_c)  # layout-preserving when Wh % 8 == 0
    bot = bot_ref[...].reshape(rows, two_c)
    _ln_project([top, bot], w_ref, wsum_ref, bias_ref, o_ref, 2 * two_c)


def patch_merging(x, gamma, beta, w_reduction, shape, *,
                  rows_per_tile=1024, compute_dtype=None):
    """
    x:           (B, L, C) with L = H*W
    gamma, beta: (4C,)       LayerNorm params
    w_reduction: (out, 4C)   nn.Linear weight (PyTorch layout, bias=False)
    shape:       (H, W)
    compute_dtype: optional dtype for x / weights / output (use jnp.bfloat16
                   in production: HBM-bound kernel -> ~2x traffic cut and the
                   native MXU path; LN statistics stay f32 either way).
    returns:     (B, (H//2)*(W//2), out)
    """
    B, L, C = x.shape
    H, W = shape
    assert L == H * W and H % 2 == 0 and W % 2 == 0
    out_dim, four_c = w_reduction.shape
    assert four_c == 4 * C

    Hh, Wh = H // 2, W // 2
    n_pairs = B * Hh                 # row-pair groups; each yields Wh out rows
    M = n_pairs * Wh                 # merged rows = B * (H/2) * (W/2)
    P = _round_up(out_dim, 128)      # lane-dense output width

    dtype = jnp.dtype(compute_dtype) if compute_dtype is not None else x.dtype
    x = x.astype(dtype)

    # ---- fold unfold permutation + LayerNorm affine into the weights -------
    # kernel feature order: f_new = (ki*2+kj)*C + c ;  F.unfold: f = c*4 + ki*2+kj
    f = jnp.arange(four_c)
    perm = (f % C) * 4 + f // C
    w_perm = jnp.transpose(w_reduction).astype(jnp.float32)[perm, :]      # (4C, out)
    w_fused = w_perm * gamma.astype(jnp.float32)[perm][:, None]           # gamma folded
    wsum = jnp.sum(w_fused, axis=0, keepdims=True)                        # (1, out) f32
    bias = (beta.astype(jnp.float32)[perm] @ w_perm).reshape(1, out_dim)  # beta @ W, f32

    if P != out_dim:   # pad to a multiple of 128 lanes -> unmasked stores
        pad = P - out_dim
        w_fused = jnp.pad(w_fused, ((0, 0), (0, pad)))
        wsum = jnp.pad(wsum, ((0, 0), (0, pad)))
        bias = jnp.pad(bias, ((0, 0), (0, pad)))
    w_fused = w_fused.astype(dtype)   # MXU operand in compute dtype
    # wsum / bias stay f32: the epilogue is f32, no per-iteration casts.

    item = jnp.dtype(dtype).itemsize
    # resident weight/bias footprint (counted double-buffered = worst case)
    w_resident = 2 * (_round_up(four_c, 8) * P * item + 2 * 8 * P * 4)

    # ---- VMEM budget (per generation: v7x 64 MiB, v5e/v6e 128 MiB) ---------
    try:
        vmem_cap = int(pltpu.get_tpu_info().vmem_capacity_bytes)
    except Exception:
        vmem_cap = 64 * 1024 * 1024   # v7x-safe fallback
    budget = min(int(vmem_cap * 0.55), 64 * 1024 * 1024)

    def _vmem_limit(estimate):
        # estimate already includes double-buffering + in-kernel temporaries;
        # add margin for compiler scratch, stay well under physical VMEM.
        return int(min(max(estimate + estimate // 4 + (8 << 20), 32 << 20),
                       int(vmem_cap * 0.9)))

    def _launch(kernel, x_operands, x_specs, out_rows, grid, vmem_limit):
        def call(single_buffer_weights):
            # Grid-invariant weight/bias blocks: single-buffered to save VMEM.
            wkw = (dict(pipeline_mode=pl.Buffered(1))
                   if single_buffer_weights else {})
            w_specs = [
                pl.BlockSpec((four_c, P), lambda i: (0, 0), **wkw),
                pl.BlockSpec((1, P), lambda i: (0, 0), **wkw),
                pl.BlockSpec((1, P), lambda i: (0, 0), **wkw),
            ]
            return pl.pallas_call(
                kernel,
                out_shape=jax.ShapeDtypeStruct((M, P), dtype),
                grid_spec=pltpu.PrefetchScalarGridSpec(
                    num_scalar_prefetch=0,
                    grid=(grid,),
                    in_specs=list(x_specs) + w_specs,
                    out_specs=pl.BlockSpec((out_rows, P), lambda i: (i, 0)),
                ),
                compiler_params=pltpu.CompilerParams(
                    dimension_semantics=("parallel",),
                    vmem_limit_bytes=vmem_limit,
                ),
            )(*x_operands, w_fused, wsum, bias)

        try:
            return call(True)
        except Exception:
            # pl.Buffered(1) unsupported on this JAX/libtpu -> fall back to the
            # default double-buffered (small) weight blocks.
            return call(False)

    if 2 * C < 128:
        # ---- tiny-C path: lane-dense merged slab ----------------------------
        # With only 2C lanes used, the no-transpose read pattern is mostly
        # padding; gather the 2x2 windows once in XLA and run a single K=4C
        # MXU pass per tile on a contiguous (M, 4C) slab.
        x_m = (x.reshape(B, Hh, 2, Wh, 2, C)
                .transpose(0, 1, 3, 2, 4, 5)
                .reshape(M, four_c))

        def est(tm):
            in_blk = tm * _round_up(four_c, 128) * item
            out_blk = tm * P * item
            temps = tm * _round_up(four_c, 128) * 4 + 2 * tm * P * 4
            return 2 * in_blk + 2 * out_blk + w_resident + temps

        tm = min(_round_up(rows_per_tile, 8), _round_up(M, 8))
        if M >= 16:                        # keep >=2 grid steps for v7x's 2 TCs
            tm = min(tm, _round_up(pl.cdiv(M, 2), 8))
        while tm > 8 and est(tm) > budget:
            tm = max(8, _round_up(tm // 2, 8))
        grid = pl.cdiv(M, tm)

        x_specs = [pl.BlockSpec((tm, four_c), lambda i: (i, 0))]
        out_flat = _launch(_merged_rows_kernel, [x_m], x_specs, tm, grid,
                           _vmem_limit(est(tm)))
    else:
        # ---- production path: 2C >= 128 lanes, no HBM-materialized transpose
        # x is read through a copy-free (B*H/2, 2, W/2, 2C) view; the two
        # BlockSpecs deliver the top / bottom pixel rows of each 2x2 window as
        # separate (R, Wh, 2C) tiles (middle dim squeezed at the DMA level).
        x4 = x.reshape(n_pairs, 2, Wh, 2 * C)
        sub = 8 // math.gcd(Wh, 8)          # R multiple of sub -> R*Wh % 8 == 0

        def est(r):
            rows = r * Wh
            in_blk = 2 * r * _round_up(Wh, 8) * _round_up(2 * C, 128) * item
            out_blk = rows * P * item
            temps = 2 * rows * _round_up(2 * C, 128) * 4 + 2 * rows * P * 4
            return 2 * in_blk + 2 * out_blk + w_resident + temps

        r = max(sub, (max(1, rows_per_tile // Wh) // sub) * sub)
        r = min(r, _round_up(n_pairs, sub))
        if n_pairs >= 2 * sub:              # keep >=2 grid steps for v7x's 2 TCs
            r = min(r, _round_up(pl.cdiv(n_pairs, 2), sub))
        while r > sub and est(r) > budget:
            r = max(sub, _round_up(r // 2, sub))
        grid = pl.cdiv(n_pairs, r)

        x_specs = [
            pl.BlockSpec((r, pl.Squeezed(), Wh, 2 * C), lambda i: (i, 0, 0, 0)),
            pl.BlockSpec((r, pl.Squeezed(), Wh, 2 * C), lambda i: (i, 1, 0, 0)),
        ]
        out_flat = _launch(_split_rows_kernel, [x4, x4], x_specs, r * Wh, grid,
                           _vmem_limit(est(r)))

    out = out_flat[:, :out_dim] if P != out_dim else out_flat
    return out.reshape(B, Hh * Wh, out_dim)


def _reference(x, gamma, beta, w_reduction, shape):
    """Pure-JAX reference mirroring the PyTorch forward."""
    B, L, C = x.shape
    H, W = shape
    xg = x.reshape(B, H // 2, 2, W // 2, 2, C)
    xg = jnp.transpose(xg, (0, 1, 3, 5, 2, 4)).reshape(B, (H // 2) * (W // 2), 4 * C)
    mean = jnp.mean(xg, axis=-1, keepdims=True)
    var = jnp.mean((xg - mean) ** 2, axis=-1, keepdims=True)
    xn = (xg - mean) / jnp.sqrt(var + LN_EPS)
    return (xn * gamma + beta) @ w_reduction.T


if __name__ == "__main__":
    keys = jax.random.split(jax.random.PRNGKey(0), 8)

    # ---- config 1: tiny-C regime (in_dim=4, shape=(16,16), out_dim=8) ------
    B, C, H, W, out_dim = 2, 4, 16, 16, 8
    x = jax.random.normal(keys[0], (B, H * W, C), dtype=jnp.float32)
    gamma = (jnp.ones((4 * C,), jnp.float32)
             + 0.01 * jax.random.normal(keys[1], (4 * C,), dtype=jnp.float32))
    beta = 0.01 * jax.random.normal(keys[2], (4 * C,), dtype=jnp.float32)
    w_red = 0.1 * jax.random.normal(keys[3], (out_dim, 4 * C), dtype=jnp.float32)

    out = jax.block_until_ready(patch_merging(x, gamma, beta, w_red, (H, W)))
    ref = _reference(x, gamma, beta, w_red, (H, W))
    assert out.shape == (B, (H // 2) * (W // 2), out_dim)
    assert jnp.allclose(out, ref, atol=2e-3, rtol=2e-3), float(
        jnp.max(jnp.abs(out - ref)))

    # bf16 end-to-end (production default: halves HBM traffic, native MXU path)
    out_bf = jax.block_until_ready(
        patch_merging(x, gamma, beta, w_red, (H, W), compute_dtype=jnp.bfloat16))
    assert jnp.allclose(out_bf.astype(jnp.float32), ref, atol=6e-2, rtol=6e-2)

    # ---- config 2: production-style regime (2C >= 128 -> split path) -------
    B2, C2, H2, W2, out2 = 1, 64, 16, 16, 128
    x2 = jax.random.normal(keys[4], (B2, H2 * W2, C2), dtype=jnp.float32)
    gamma2 = (jnp.ones((4 * C2,), jnp.float32)
              + 0.01 * jax.random.normal(keys[5], (4 * C2,), dtype=jnp.float32))
    beta2 = 0.01 * jax.random.normal(keys[6], (4 * C2,), dtype=jnp.float32)
    w2 = 0.1 * jax.random.normal(keys[7], (out2, 4 * C2), dtype=jnp.float32)

    out2_v = jax.block_until_ready(patch_merging(x2, gamma2, beta2, w2, (H2, W2)))
    ref2 = _reference(x2, gamma2, beta2, w2, (H2, W2))
    assert out2_v.shape == (B2, (H2 // 2) * (W2 // 2), out2)
    assert jnp.allclose(out2_v, ref2, atol=2e-3, rtol=2e-3), float(
        jnp.max(jnp.abs(out2_v - ref2)))

    print("KERNEL_OK")
</pallas_src>

<mosaic_0001>
module attributes {stable_mosaic.version = 11 : i64} {
  func.func @_merged_rows_kernel(%arg0: i32, %arg1: memref<64x16xf32, #tpu.memory_space<vmem>>, %arg2: memref<16x128xf32, #tpu.memory_space<vmem>>, %arg3: memref<1x128xf32, #tpu.memory_space<vmem>>, %arg4: memref<1x128xf32, #tpu.memory_space<vmem>>, %arg5: memref<64x128xf32, #tpu.memory_space<vmem>>) attributes {dimension_semantics = [#tpu.dimension_semantics<parallel>], iteration_bounds = array<i64: 2>, scalar_prefetch = 0 : i64, scratch_operands = 0 : i64, tpu.core_type = #tpu.core_type<tc>, window_params = [{transform_indices = @transform_0, window_bounds = array<i64: 64, 16>}, {pipeline_mode = #tpu.pipeline_mode<synchronous>, transform_indices = @transform_1, window_bounds = array<i64: 16, 128>}, {pipeline_mode = #tpu.pipeline_mode<synchronous>, transform_indices = @transform_2, window_bounds = array<i64: 1, 128>}, {pipeline_mode = #tpu.pipeline_mode<synchronous>, transform_indices = @transform_3, window_bounds = array<i64: 1, 128>}, {transform_indices = @transform_4, window_bounds = array<i64: 64, 128>}]} {
    %c0 = arith.constant 0 : index
    %c0_0 = arith.constant 0 : index
    %0 = vector.load %arg1[%c0, %c0_0] : memref<64x16xf32, #tpu.memory_space<vmem>>, vector<64x16xf32>
    %cst = arith.constant dense<0.000000e+00> : vector<64xf32>
    %1 = vector.multi_reduction <add>, %0, %cst [1] : vector<64x16xf32> to vector<64xf32>
    %2 = vector.shape_cast %1 : vector<64xf32> to vector<64x1xf32>
    %3 = arith.mulf %0, %0 : vector<64x16xf32>
    %cst_1 = arith.constant dense<0.000000e+00> : vector<64xf32>
    %4 = vector.multi_reduction <add>, %3, %cst_1 [1] : vector<64x16xf32> to vector<64xf32>
    %5 = vector.shape_cast %4 : vector<64xf32> to vector<64x1xf32>
    %cst_2 = arith.constant 6.250000e-02 : f32
    %6 = vector.broadcast %cst_2 : f32 to vector<64x1xf32>
    %7 = arith.mulf %2, %6 : vector<64x1xf32>
    %cst_3 = arith.constant 6.250000e-02 : f32
    %8 = vector.broadcast %cst_3 : f32 to vector<64x1xf32>
    %9 = arith.mulf %5, %8 : vector<64x1xf32>
    %10 = arith.mulf %7, %7 : vector<64x1xf32>
    %11 = arith.subf %9, %10 : vector<64x1xf32>
    %cst_4 = arith.constant 0.000000e+00 : f32
    %12 = vector.broadcast %cst_4 : f32 to vector<64x1xf32>
    %13 = arith.maximumf %11, %12 : vector<64x1xf32>
    %cst_5 = arith.constant 9.99999974E-6 : f32
    %14 = vector.broadcast %cst_5 : f32 to vector<64x1xf32>
    %15 = arith.addf %13, %14 : vector<64x1xf32>
    %16 = math.rsqrt %15 : vector<64x1xf32>
    %c0_6 = arith.constant 0 : index
    %c0_7 = arith.constant 0 : index
    %17 = vector.load %arg2[%c0_6, %c0_7] : memref<16x128xf32, #tpu.memory_space<vmem>>, vector<16x128xf32>
    %cst_8 = arith.constant dense<0.000000e+00> : vector<64x128xf32>
    %18 = tpu.matmul %0, %17, %cst_8 {dimension_numbers = #tpu.dot_dimension_numbers<[1], [0], [0], [1], [0, 0, 1, 1], [], []>} : vector<64x16xf32>, vector<16x128xf32>, vector<64x128xf32> -> vector<64x128xf32>
    %c0_9 = arith.constant 0 : index
    %c0_10 = arith.constant 0 : index
    %19 = vector.load %arg3[%c0_9, %c0_10] : memref<1x128xf32, #tpu.memory_space<vmem>>, vector<1x128xf32>
    %20 = vector.broadcast %7 : vector<64x1xf32> to vector<64x128xf32>
    %21 = vector.broadcast %19 : vector<1x128xf32> to vector<64x128xf32>
    %22 = arith.mulf %20, %21 : vector<64x128xf32>
    %23 = arith.subf %18, %22 : vector<64x128xf32>
    %24 = vector.broadcast %16 : vector<64x1xf32> to vector<64x128xf32>
    %25 = arith.mulf %24, %23 : vector<64x128xf32>
    %c0_11 = arith.constant 0 : index
    %c0_12 = arith.constant 0 : index
    %26 = vector.load %arg4[%c0_11, %c0_12] : memref<1x128xf32, #tpu.memory_space<vmem>>, vector<1x128xf32>
    %27 = vector.broadcast %26 : vector<1x128xf32> to vector<64x128xf32>
    %28 = arith.addf %25, %27 : vector<64x128xf32>
    %c0_13 = arith.constant 0 : index
    %c0_14 = arith.constant 0 : index
    %29 = vector.load %arg5[%c0_13, %c0_14] : memref<64x128xf32, #tpu.memory_space<vmem>>, vector<64x128xf32>
    tpu.vector_store %arg5[%c0_13, %c0_14], %28 {strides = array<i32>} : memref<64x128xf32, #tpu.memory_space<vmem>>, vector<64x128xf32>,
    return
  }
  func.func @transform_0(%arg0: i32) -> (i32, i32) {
    %c0_i32 = arith.constant 0 : i32
    %c0_i32_0 = arith.constant 0 : i32
    return %arg0, %c0_i32 : i32, i32
  }
  func.func @transform_1(%arg0: i32) -> (i32, i32) {
    %c0_i32 = arith.constant 0 : i32
    %c0_i32_0 = arith.constant 0 : i32
    %c0_i32_1 = arith.constant 0 : i32
    return %c0_i32, %c0_i32_0 : i32, i32
  }
  func.func @transform_2(%arg0: i32) -> (i32, i32) {
    %c0_i32 = arith.constant 0 : i32
    %c0_i32_0 = arith.constant 0 : i32
    %c0_i32_1 = arith.constant 0 : i32
    return %c0_i32, %c0_i32_0 : i32, i32
  }
  func.func @transform_3(%arg0: i32) -> (i32, i32) {
    %c0_i32 = arith.constant 0 : i32
    %c0_i32_0 = arith.constant 0 : i32
    %c0_i32_1 = arith.constant 0 : i32
    return %c0_i32, %c0_i32_0 : i32, i32
  }
  func.func @transform_4(%arg0: i32) -> (i32, i32) {
    %c0_i32 = arith.constant 0 : i32
    %c0_i32_0 = arith.constant 0 : i32
    return %arg0, %c0_i32 : i32, i32
  }
}

module attributes {stable_mosaic.version = 11 : i64} {
  func.func @_merged_rows_kernel(%arg0: i32, %arg1: memref<64x16xf32, #tpu.memory_space<vmem>>, %arg2: memref<16x128xf32, #tpu.memory_space<vmem>>, %arg3: memref<1x128xf32, #tpu.memory_space<vmem>>, %arg4: memref<1x128xf32, #tpu.memory_space<vmem>>, %arg5: memref<64x128xf32, #tpu.memory_space<vmem>>) attributes {dimension_semantics = [#tpu.dimension_semantics<parallel>], iteration_bounds = array<i64: 2>, scalar_prefetch = 0 : i64, scratch_operands = 0 : i64, tpu.core_type = #tpu.core_type<tc>, window_params = [{transform_indices = @transform_0, window_bounds = array<i64: 64, 16>}, {pipeline_mode = #tpu.pipeline_mode<synchronous>, transform_indices = @transform_1, window_bounds = array<i64: 16, 128>}, {pipeline_mode = #tpu.pipeline_mode<synchronous>, transform_indices = @transform_2, window_bounds = array<i64: 1, 128>}, {pipeline_mode = #tpu.pipeline_mode<synchronous>, transform_indices = @transform_3, window_bounds = array<i64: 1, 128>}, {transform_indices = @transform_4, window_bounds = array<i64: 64, 128>}]} {
    %c0 = arith.constant 0 : index
    %c0_0 = arith.constant 0 : index
    %0 = vector.load %arg1[%c0, %c0_0] : memref<64x16xf32, #tpu.memory_space<vmem>>, vector<64x16xf32>
    %cst = arith.constant dense<0.000000e+00> : vector<64xf32>
    %1 = vector.multi_reduction <add>, %0, %cst [1] : vector<64x16xf32> to vector<64xf32>
    %2 = vector.shape_cast %1 : vector<64xf32> to vector<64x1xf32>
    %3 = arith.mulf %0, %0 : vector<64x16xf32>
    %cst_1 = arith.constant dense<0.000000e+00> : vector<64xf32>
    %4 = vector.multi_reduction <add>, %3, %cst_1 [1] : vector<64x16xf32> to vector<64xf32>
    %5 = vector.shape_cast %4 : vector<64xf32> to vector<64x1xf32>
    %cst_2 = arith.constant 6.250000e-02 : f32
    %6 = vector.broadcast %cst_2 : f32 to vector<64x1xf32>
    %7 = arith.mulf %2, %6 : vector<64x1xf32>
    %cst_3 = arith.constant 6.250000e-02 : f32
    %8 = vector.broadcast %cst_3 : f32 to vector<64x1xf32>
    %9 = arith.mulf %5, %8 : vector<64x1xf32>
    %10 = arith.mulf %7, %7 : vector<64x1xf32>
    %11 = arith.subf %9, %10 : vector<64x1xf32>
    %cst_4 = arith.constant 0.000000e+00 : f32
    %12 = vector.broadcast %cst_4 : f32 to vector<64x1xf32>
    %13 = arith.maximumf %11, %12 : vector<64x1xf32>
    %cst_5 = arith.constant 9.99999974E-6 : f32
    %14 = vector.broadcast %cst_5 : f32 to vector<64x1xf32>
    %15 = arith.addf %13, %14 : vector<64x1xf32>
    %16 = math.rsqrt %15 : vector<64x1xf32>
    %c0_6 = arith.constant 0 : index
    %c0_7 = arith.constant 0 : index
    %17 = vector.load %arg2[%c0_6, %c0_7] : memref<16x128xf32, #tpu.memory_space<vmem>>, vector<16x128xf32>
    %cst_8 = arith.constant dense<0.000000e+00> : vector<64x128xf32>
    %18 = tpu.matmul %0, %17, %cst_8 {dimension_numbers = #tpu.dot_dimension_numbers<[1], [0], [0], [1], [0, 0, 1, 1], [], []>} : vector<64x16xf32>, vector<16x128xf32>, vector<64x128xf32> -> vector<64x128xf32>
    %c0_9 = arith.constant 0 : index
    %c0_10 = arith.constant 0 : index
    %19 = vector.load %arg3[%c0_9, %c0_10] : memref<1x128xf32, #tpu.memory_space<vmem>>, vector<1x128xf32>
    %20 = vector.broadcast %7 : vector<64x1xf32> to vector<64x128xf32>
    %21 = vector.broadcast %19 : vector<1x128xf32> to vector<64x128xf32>
    %22 = arith.mulf %20, %21 : vector<64x128xf32>
    %23 = arith.subf %18, %22 : vector<64x128xf32>
    %24 = vector.broadcast %16 : vector<64x1xf32> to vector<64x128xf32>
    %25 = arith.mulf %24, %23 : vector<64x128xf32>
    %c0_11 = arith.constant 0 : index
    %c0_12 = arith.constant 0 : index
    %26 = vector.load %arg4[%c0_11, %c0_12] : memref<1x128xf32, #tpu.memory_space<vmem>>, vector<1x128xf32>
    %27 = vector.broadcast %26 : vector<1x128xf32> to vector<64x128xf32>
    %28 = arith.addf %25, %27 : vector<64x128xf32>
    %c0_13 = arith.constant 0 : index
    %c0_14 = arith.constant 0 : index
    %29 = vector.load %arg5[%c0_13, %c0_14] : memref<64x128xf32, #tpu.memory_space<vmem>>, vector<64x128xf32>
    tpu.vector_store %arg5[%c0_13, %c0_14], %28 {strides = array<i32>} : memref<64x128xf32, #tpu.memory_space<vmem>>, vector<64x128xf32>,
    return
  }
  func.func @transform_0(%arg0: i32) -> (i32, i32) {
    %c0_i32 = arith.constant 0 : i32
    %c0_i32_0 = arith.constant 0 : i32
    return %arg0, %c0_i32 : i32, i32
  }
  func.func @transform_1(%arg0: i32) -> (i32, i32) {
    %c0_i32 = arith.constant 0 : i32
    %c0_i32_0 = arith.constant 0 : i32
    %c0_i32_1 = arith.constant 0 : i32
    return %c0_i32, %c0_i32_0 : i32, i32
  }
  func.func @transform_2(%arg0: i32) -> (i32, i32) {
    %c0_i32 = arith.constant 0 : i32
    %c0_i32_0 = arith.constant 0 : i32
    %c0_i32_1 = arith.constant 0 : i32
    return %c0_i32, %c0_i32_0 : i32, i32
  }
  func.func @transform_3(%arg0: i32) -> (i32, i32) {
    %c0_i32 = arith.constant 0 : i32
    %c0_i32_0 = arith.constant 0 : i32
    %c0_i32_1 = arith.constant 0 : i32
    return %c0_i32, %c0_i32_0 : i32, i32
  }
  func.func @transform_4(%arg0: i32) -> (i32, i32) {
    %c0_i32 = arith.constant 0 : i32
    %c0_i32_0 = arith.constant 0 : i32
    return %arg0, %c0_i32 : i32, i32
  }
}

</mosaic_0001>

<bundles_post_ra>
// kernel: tpu_custom_call.1
= control target key start
LH: loop header
LB: loop body
LE: loop exit
PB: predicated region body
PF: predicated region fallthrough
CT: control target
= control target key end

     0   :  { %9 = vsyncpa [#allocation3], 0  ;;  %s1026_s0 = inlined_call_operand.vmem [shape: f32[128,16], index: 0, kind: input, shape index: {}]   ;;  %s1027_s1 = inlined_call_operand.vmem [shape: f32[16,128], index: 1, kind: input, shape index: {}]   ;;  %s1028_s2 = inlined_call_operand.vmem [shape: f32[1,128], index: 2, kind: input, shape index: {}]   ;;  %s1029_s3 = inlined_call_operand.vmem [shape: f32[1,128], index: 3, kind: input, shape index: {}]   ;;  %s1030_s4 = inlined_call_operand.hbm [shape: f32[128,128], index: 4, kind: output, shape index: {}]  }
   0x1   :  { %11 = vsyncpa [#allocation3 + $0x1], 0  ;;  %s762_s15 = smov 0   ;;  %s764_s16 = smov 0  }
   0x2   :  { %s766_s17 = smov 0   ;;  %s768_s18 = smov 0  }
   0x3 LB: > { %s783_s19 = sadd.s32 4294967295, %s733_s18   ;;  %s585_s20 = sadd.s32 4294967294, %s733_s18   ;;  %s733_s18 = sphi %s768_s18, %s1036_s18   ;;  %s729_s17 = sphi %s766_s17, %s1035_s17   ;;  %s725_s16 = sphi %s764_s16, %s1034_s16   ;;  %s721_s15 = sphi %s762_s15, %s1033_s15  }
   0x4   : > { %s787_s21 = sadd.s32 1, %s733_s18   ;;  %s113_s22 = sadd.s32 1, %s729_s17 }
   0x5   : > { %s110_s23 = ssub.s32 %s733_s18, %s787_s21  ;;  %p123_p0 = scmp.ne.s32.totalorder %s729_s17, %s725_s16 }
   0x6   : > { %p111_p1 = scmp.eq.s32.totalorder %s110_s23, 0  ;;  %p124_p2 = scmp.eq.s32.totalorder %s783_s19, 1 }
   0x7   : > { %p129_p3 = scmp.ne.s32.totalorder %s725_s16, %s721_s15  ;;  %p130_p4 = scmp.eq.s32.totalorder %s585_s20, 1 }
   0x8   : > { %s798_s24 = scalar_select %p111_p1, %s729_s17, %s113_s22  }
   0x9   : > { %p800_p5 = por %p124_p2, %p123_p0  ;;  %p804_p6 = por %p130_p4, %p129_p3 }
   0xa   : > { %p588_p7 = scmp.ge.s32.totalorder %s733_s18, 1  ;;  %p166_p8 = scmp.lt.s32.totalorder %s733_s18, 3 }
   0xc   : > { %p167_p9 = pnand %p588_p7, %p166_p8 }
   0xd   : > { %s590_s5 = sshll.u32 (!%p167_p9), %s783_s19, 3  ;;  %s189_s12 = sand.u32 (!%p167_p9), 1, %s725_s16  }
   0xe   : > { %170 = sbr.rel (%p167_p9) target bundleno = 217 (0xd9), region = 36  ;;  %p193_p10 = scmp.lt.s32.totalorder (!%p167_p9), %s590_s5, 15 }
   0xf   : > { %s589_s20 = sshll.u32 (!%p167_p9), %s189_s12, 6  ;;  %s605_s23 = sshll.u32 (!%p167_p9), %s783_s19, 6 }
  0x10   : > { %s939_s22 = scalar_lea.vmem (!%p167_p9), [#allocation2], %s589_s20  ;;  %s519_s29 = scalar_lea.hbm (!%p167_p9), %s1030_s4, %s605_s23 }
  0x11   : > { %s520_s19 = sshll.u32 (!%p167_p9), %s939_s22, 4  ;;  %s522_s30 = sshll.u32 (!%p167_p9), %s519_s29, 4  ;;  %s521_s19 = int_to_ptr.vmem [resolvable:$true] %s520_s19  ;;  %s523_s30 = int_to_ptr.hbm [resolvable:$true] %s522_s30 }
  0x12   : > { %s691_s10 = scalar_lea.hbm (!%p167_p9), %s1030_s4, 128 }
  0x13   : > { %v393_v0 = vld [vmem:[%s1027_s1 + $0x8] sm:$0xff]  ;;  %v392_v1 = vld [vmem:[%s1027_s1] sm:$0xff]  ;;  %s1038_s5 = smov (!%p193_p10, %s590_s5), 15  ;;  %vm207_vm0 = vcmask 130048  }
  0x14   : > { %432 = vmatpush.msra.mxu0 %v393_v0  ;;  %607 = vmatpush.msra.mxu2 %v393_v0  ;;  %s591_s6 = sshll.u32 %s1038_s5, 3  ;;  %s508_s5 = scalar_lea.sflag [#allocation3], %s189_s12 }
  0x15   : > { %606 = vmatpush.msra.mxu1 %v393_v0  ;;  %608 = vmatpush.msra.mxu3 %v393_v0  ;;  %s196_s9 = scalar_lea.vmem %s1026_s0, %s591_s6  ;;  %s685_s6 = sshra.s32 %s523_s30, 4  ;;  %s686_s6 = int_to_ptr.hbm [resolvable:$true] %s685_s6 }
  0x16   : > { %433 = vmatpush.msra.mxu0 %v392_v1  ;;  %610 = vmatpush.msra.mxu2 %v392_v1  ;;  %v199_v2 = vld [vmem:[%s196_s9] sm:$0xff]  ;;  %v201_v4 = vld [vmem:[%s196_s9 + $0x10] sm:$0xff]  ;;  %v204_v9 = vld [vmem:[%s196_s9 + $0x28] sm:$0xff]  ;;  %s687_s7 = scalar_lea.hbm %s686_s6, 64  ;;  %p692_p0 = scmp.lt.s32.totalorder %s686_s6, %s1030_s4 }
  0x17   : > { %609 = vmatpush.msra.mxu1 %v392_v1  ;;  %611 = vmatpush.msra.mxu3 %v392_v1  ;;  %v203_v3 = vld [vmem:[%s196_s9 + $0x20] sm:$0xff]  ;;  %v214_v6 = vsel %vm207_vm0, %v201_v4, 0.0  ;;  %v208_v7 = vsel %vm207_vm0, %v199_v2, 0.0  ;;  %v205_v8 = vld [vmem:[%s196_s9 + $0x30] sm:$0xff]  ;;  %v202_v10 = vld [vmem:[%s196_s9 + $0x18] sm:$0xff]  ;;  %v223_v12 = vsel %vm207_vm0, %v204_v9, 0.0  ;;  %v232_v16 = vmul.f32 %v199_v2, %v199_v2  ;;  %p688_p11 = scmp.ne.s32.totalorder %s686_s6, %s687_s7  ;;  %p693_p1 = scmp.lt.s32.totalorder %s691_s10, %s687_s7 }
  0x18   : > { %592 = vmatmul.msk.f32.vlgmr.msra.gmra.mxu0 %vm207_vm0, %v199_v2  ;;  %596 = vmatmul.msk.f32.vlgmr.msra.gmra.mxu2 %vm207_vm0, %v203_v3  ;;  %v220_v5 = vsel %vm207_vm0, %v203_v3, 0.0  ;;  %v200_v11 = vld [vmem:[%s196_s9 + $0x8] sm:$0xff]  ;;  %v217_v13 = vsel %vm207_vm0, %v202_v10, 0.0  ;;  %v206_v15 = vld [vmem:[%s196_s9 + $0x38] sm:$0xff]  ;;  %v226_v19 = vsel %vm207_vm0, %v205_v8, 0.0  ;;  %v234_v20 = vmul.f32 %v201_v4, %v201_v4 }
  0x19   : > { %221 = vadd.xlane.f32.xlu2 %v220_v5  ;;  %215 = vadd.xlane.f32.xlu1 %v214_v6  ;;  %v211_v14 = vsel %vm207_vm0, %v200_v11, 0.0  ;;  %v229_v17 = vsel %vm207_vm0, %v206_v15, 0.0  ;;  %v240_v18 = vsel %vm207_vm0, %v232_v16, 0.0  ;;  %v235_v21 = vmul.f32 %v202_v10, %v202_v10  ;;  %p689_p12 = pnand %p688_p11, %p800_p5  ;;  %p694_p2 = por %p693_p1, %p692_p0 }
  0x1a   : > { %209 = vadd.xlane.f32.xlu0 %v208_v7  ;;  %594 = vmatmul.msk.f32.vlgmr.msra.gmra.mxu1 %vm207_vm0, %v201_v4  ;;  %v233_v22 = vmul.f32 %v200_v11, %v200_v11  ;;  %v246_v23 = vsel %vm207_vm0, %v234_v20, 0.0  ;;  %v237_v26 = vmul.f32 %v204_v9, %v204_v9  ;;  %v238_v27 = vmul.f32 %v205_v8, %v205_v8 }
  0x1b   : > { %598 = vmatmul.msk.f32.vlgmr.msra.gmra.mxu3 %vm207_vm0, %v205_v8  ;;  %v249_v24 = vsel %vm207_vm0, %v235_v21, 0.0  ;;  %v236_v28 = vmul.f32 %v203_v3, %v203_v3  ;;  %v239_v32 = vmul.f32 %v206_v15, %v206_v15  ;;  %p690_p13 = pneg %p689_p12 }
  0x1c   : > { %v243_v25 = vsel %vm207_vm0, %v233_v22, 0.0  ;;  %v255_v29 = vsel %vm207_vm0, %v237_v26, 0.0  ;;  %v258_v30 = vsel %vm207_vm0, %v238_v27, 0.0 }
  0x1d   : > { %v252_v31 = vsel %vm207_vm0, %v236_v28, 0.0  ;;  %v261_v33 = vsel %vm207_vm0, %v239_v32, 0.0  ;;  %p695_p3 = pnand %p694_p2, %p690_p13 }
  0x20   : > { %593 = vmatmul.msk.f32.gmra.mxu0 %vm207_vm0, %v200_v11  ;;  %597 = vmatmul.msk.f32.gmra.mxu2 %vm207_vm0, %v204_v9 }
  0x21   : > { %224 = vadd.xlane.f32.xlu2 %v223_v12  ;;  %218 = vadd.xlane.f32.xlu1 %v217_v13 }
  0x22   : > { %212 = vadd.xlane.f32.xlu0 %v211_v14  ;;  %595 = vmatmul.msk.f32.gmra.mxu1 %vm207_vm0, %v202_v10 }
  0x23   : > { %599 = vmatmul.msk.f32.gmra.mxu3 %vm207_vm0, %v206_v15  ;;  %v877_v15 = vld [vmem:[%s1028_s2] ss:$0 sm:$0xff] }
  0x29   : > { %230 = vadd.xlane.f32.xlu1 %v229_v17  ;;  %241 = vadd.xlane.f32.xlu2 %v240_v18 }
  0x2a   : > { %227 = vadd.xlane.f32.xlu0 %v226_v19 }
  0x31   : > { %247 = vadd.xlane.f32.xlu1 %v246_v23  ;;  %250 = vadd.xlane.f32.xlu2 %v249_v24 }
  0x32   : > { %244 = vadd.xlane.f32.xlu0 %v243_v25 }
  0x39   : > { %256 = vadd.xlane.f32.xlu1 %v255_v29  ;;  %259 = vadd.xlane.f32.xlu2 %v258_v30 }
  0x3a   : > { %253 = vadd.xlane.f32.xlu0 %v252_v31 }
  0x42   : > { %262 = vadd.xlane.f32.xlu0 %v261_v33 }
  0x8c   : > { %v222_v34 = vpop.xlane.xlu2 %221  ;;  %v216_v35 = vpop.xlane.xlu1 %215 }
  0x8d   : > { %v210_v36 = vpop.xlane.xlu0 %209  ;;  %v266_v47 = vmul.f32 0.0625, %v216_v35  ;;  %v861_v6 = vmul.f32 0.0625, %v222_v34 }
  0x8e   : > { %v264_v40 = vmul.f32 0.0625, %v210_v36 }
  0x8f   : > { %v282_v52 = vmul.f32 %v266_v47, %v266_v47  ;;  %v284_v21 = vmul.f32 %v861_v6, %v861_v6  ;;  %v888_v30 = vmul.f32 %v877_v15, %v266_v47 }
  0x90   : > { %v280_v43 = vmul.f32 %v264_v40, %v264_v40  ;;  %v463_v27 = vmul.f32 %v877_v15, %v264_v40 }
  0x94   : > { %v225_v37 = vpop.xlane.xlu2 %224  ;;  %v219_v38 = vpop.xlane.xlu1 %218 }
  0x95   : > { %v213_v39 = vpop.xlane.xlu0 %212  ;;  %v846_v48 = vmul.f32 0.0625, %v219_v38  ;;  %v857_v0 = vmul.f32 0.0625, %v225_v37  ;;  %v435_v24 = vpop.f32.mrf.mxu0 }
  0x96   : > { %v848_v50 = vmul.f32 0.0625, %v213_v39  ;;  %v471_v34 = vsub.f32 %v435_v24, %v463_v27 }
  0x97   : > { %v283_v55 = vmul.f32 %v846_v48, %v846_v48  ;;  %v863_v7 = vpop.f32.mrf.mxu1  ;;  %v285_v14 = vmul.f32 %v857_v0, %v857_v0 }
  0x98   : > { %v281_v59 = vmul.f32 %v848_v50, %v848_v50 }
  0x9c   : > { %v844_v41 = vpop.xlane.xlu1 %230  ;;  %v242_v42 = vpop.xlane.xlu2 %241 }
  0x9d   : > { %v272_v44 = vmul.f32 0.0625, %v242_v42  ;;  %v228_v45 = vpop.xlane.xlu0 %227 }
  0x9e   : > { %v859_v3 = vmul.f32 0.0625, %v228_v45  ;;  %v466_v45 = vmul.f32 %v877_v15, %v846_v48  ;;  %v464_v48 = vmul.f32 %v877_v15, %v848_v50 }
  0x9f   : > { %v288_v46 = vsub.f32 %v272_v44, %v280_v43  ;;  %v905_v43 = vmul.f32 0.0625, %v844_v41  ;;  %v910_v44 = vld [vmem:[%s1029_s3] ss:$0 sm:$0xff]  ;;  %v473_v41 = vsub.f32 %v863_v7, %v888_v30 }
  0xa0   : > { %v286_v19 = vmul.f32 %v859_v3, %v859_v3 }
  0xa1   : > { %v296_v49 = vmax.f32 %v288_v46, 0.0 }
  0xa3   : > { %v850_v51 = vadd.f32 1e-05, %v296_v49 }
  0xa4   : > { %v248_v53 = vpop.xlane.xlu1 %247  ;;  %v251_v54 = vpop.xlane.xlu2 %250 }
  0xa5   : > { %655 = vrsqrt.f32 %v850_v51  ;;  %v274_v56 = vmul.f32 0.0625, %v248_v53  ;;  %v275_v57 = vmul.f32 0.0625, %v251_v54  ;;  %v245_v58 = vpop.xlane.xlu0 %244  ;;  %vm318_vm2 = vweird.f32 %v850_v51 }
  0xa6   : > { %v273_v60 = vmul.f32 0.0625, %v245_v58 }
  0xa7   : > { %v290_v61 = vsub.f32 %v274_v56, %v282_v52  ;;  %v291_v62 = vsub.f32 %v275_v57, %v283_v55  ;;  %v929_v56 = vpop.f32.mrf.mxu2 }
  0xa8   : > { %v289_v63 = vsub.f32 %v273_v60, %v281_v59 }
  0xa9   : > { %v298_v1 = vmax.f32 %v290_v61, 0.0  ;;  %v299_v2 = vmax.f32 %v291_v62, 0.0  ;;  %v287_v61 = vmul.f32 %v905_v43, %v905_v43 }
  0xaa   : > { %v297_v4 = vmax.f32 %v289_v63, 0.0 }
  0xab   : > { %v656_v5 = vpop.eup %655  ;;  %v865_v8 = vadd.f32 1e-05, %v298_v1  ;;  %v867_v9 = vadd.f32 1e-05, %v299_v2 }
  0xac   : > { %v313_v10 = vmul.f32 %v656_v5, %v850_v51  ;;  %v870_v11 = vadd.f32 1e-05, %v297_v4  ;;  %v257_v12 = vpop.xlane.xlu1 %256  ;;  %v260_v13 = vpop.xlane.xlu2 %259  ;;  %vm319_vm1 = vweird.f32 %v656_v5 }
  0xad   : > { %657 = vrsqrt.f32 %v865_v8  ;;  %v277_v16 = vmul.f32 0.0625, %v257_v12  ;;  %v254_v17 = vpop.xlane.xlu0 %253  ;;  %v278_v20 = vmul.f32 0.0625, %v260_v13  ;;  %vm320_vm3 = vmor %vm318_vm2, %vm319_vm1  ;;  %v444_v51 = vpop.f32.mrf.mxu1  ;;  %vm338_vm5 = vweird.f32 %v865_v8 }
  0xae   : > { %v314_v18 = vmul.f32 %v656_v5, %v313_v10  ;;  %659 = vrsqrt.f32 %v867_v9  ;;  %v276_v23 = vmul.f32 0.0625, %v254_v17  ;;  %v474_v63 = vsub.f32 %v444_v51, %v466_v45  ;;  %v438_v10 = vpop.f32.mrf.mxu0  ;;  %v453_v45 = vpop.f32.mrf.mxu3 }
  0xaf   : > { %661 = vrsqrt.f32 %v870_v11  ;;  %v293_v22 = vsub.f32 %v277_v16, %v285_v14  ;;  %v294_v26 = vsub.f32 %v278_v20, %v286_v19  ;;  %vm348_vm9 = vweird.f32 %v867_v9 }
  0xb0   : > { %v315_v25 = vmul.f32 0.5, %v314_v18  ;;  %v292_v29 = vsub.f32 %v276_v23, %v284_v21  ;;  %vm328_vm10 = vweird.f32 %v870_v11 }
  0xb1   : > { %v301_v28 = vmax.f32 %v293_v22, 0.0  ;;  %v302_v32 = vmax.f32 %v294_v26, 0.0  ;;  %v472_v22 = vsub.f32 %v438_v10, %v464_v48 }
  0xb2   : > { %v316_v31 = vsub.f32 1.5, %v315_v25  ;;  %v300_v40 = vmax.f32 %v292_v29, 0.0 }
  0xb3   : > { %v891_v33 = vpop.eup %657  ;;  %v894_v35 = vadd.f32 1e-05, %v301_v28  ;;  %v900_v39 = vadd.f32 1e-05, %v302_v32  ;;  %v450_v32 = vpop.f32.mrf.mxu2 }
  0xb4   : > { %v896_v36 = vpop.eup %659  ;;  %v317_v37 = vmul.f32 %v656_v5, %v316_v31  ;;  %v333_v38 = vmul.f32 %v891_v33, %v865_v8  ;;  %v932_v59 = vadd.f32 1e-05, %v300_v40  ;;  %vm339_vm4 = vweird.f32 %v891_v33 }
  0xb5   : > { %v902_v42 = vpop.eup %661  ;;  %v343_v46 = vmul.f32 %v896_v36, %v867_v9  ;;  %663 = vrsqrt.f32 %v894_v35  ;;  %v263_v47 = vpop.xlane.xlu0 %262  ;;  %vm349_vm6 = vweird.f32 %v896_v36  ;;  %vm340_vm8 = vmor %vm338_vm5, %vm339_vm4  ;;  %vm368_vm14 = vweird.f32 %v894_v35 }
  0xb6   : > { %v321_v49 = vsel %vm320_vm3, %v656_v5, %v317_v37  ;;  %v334_v52 = vmul.f32 %v891_v33, %v333_v38  ;;  %v323_v53 = vmul.f32 %v902_v42, %v870_v11  ;;  %665 = vrsqrt.f32 %v900_v39  ;;  %vm350_vm11 = vmor %vm348_vm9, %vm349_vm6 }
  0xb7   : > { %v479_v54 = vmul.f32 %v471_v34, %v321_v49  ;;  %v344_v55 = vmul.f32 %v896_v36, %v343_v46  ;;  %v279_v60 = vmul.f32 0.0625, %v263_v47  ;;  %667 = vrsqrt.f32 %v932_v59 }
  0xb8   : > { %v335_v57 = vmul.f32 0.5, %v334_v52  ;;  %v324_v58 = vmul.f32 %v902_v42, %v323_v53  ;;  %vm329_vm7 = vweird.f32 %v902_v42  ;;  %v469_v37 = vmul.f32 %v877_v15, %v859_v3 }
  0xb9   : > { %v491_v62 = vadd.f32 %v910_v44, %v479_v54  ;;  %v345_v1 = vmul.f32 0.5, %v344_v55  ;;  %v295_v7 = vsub.f32 %v279_v60, %v287_v61  ;;  %vm330_vm12 = vmor %vm328_vm10, %vm329_vm7  ;;  %v468_v38 = vmul.f32 %v877_v15, %v857_v0 }
  0xba   : > { %v336_v50 = vsub.f32 1.5, %v335_v57  ;;  %v325_v2 = vmul.f32 0.5, %v324_v58  ;;  %vm378_vm1 = vweird.f32 %v900_v39  ;;  %v477_v0 = vsub.f32 %v453_v45, %v469_v37 }
  0xbb   : > { %v664_v4 = vpop.eup %663  ;;  %499 = vst [vmem:[%s939_s22] sm:$0xff] %v491_v62  ;;  %v346_v5 = vsub.f32 1.5, %v345_v1  ;;  %v303_v8 = vmax.f32 %v295_v7, 0.0  ;;  %vm358_vm4 = vweird.f32 %v932_v59  ;;  %v470_v1 = vmul.f32 %v877_v15, %v905_v43 }
  0xbc   : > { %v337_v12 = vmul.f32 %v891_v33, %v336_v50  ;;  %v326_v13 = vsub.f32 1.5, %v325_v2  ;;  %v363_v14 = vmul.f32 %v664_v4, %v894_v35  ;;  %v666_v16 = vpop.eup %665  ;;  %vm369_vm13 = vweird.f32 %v664_v4  ;;  %v456_v2 = vpop.f32.mrf.mxu3 }
  0xbd   : > { %v347_v17 = vmul.f32 %v896_v36, %v346_v5  ;;  %v373_v21 = vmul.f32 %v666_v16, %v900_v39  ;;  %v958_v25 = vadd.f32 1e-05, %v303_v8  ;;  %v668_v9 = vpop.eup %667  ;;  %vm379_vm15 = vweird.f32 %v666_v16  ;;  %vm370_vm0 = vmor %vm368_vm14, %vm369_vm13 }
  0xbe   : > { %v341_v18 = vsel %vm340_vm8, %v891_v33, %v337_v12  ;;  %v327_v19 = vmul.f32 %v902_v42, %v326_v13  ;;  %v364_v20 = vmul.f32 %v664_v4, %v363_v14  ;;  %v353_v31 = vmul.f32 %v668_v9, %v932_v59  ;;  %vm380_vm2 = vmor %vm378_vm1, %vm379_vm15 }
  0xbf   : > { %v481_v23 = vmul.f32 %v473_v41, %v341_v18  ;;  %v351_v24 = vsel %vm350_vm11, %v896_v36, %v347_v17  ;;  %v374_v28 = vmul.f32 %v666_v16, %v373_v21  ;;  %669 = vrsqrt.f32 %v958_v25 }
  0xc0   : > { %v482_v11 = vmul.f32 %v474_v63, %v351_v24  ;;  %v331_v26 = vsel %vm330_vm12, %v902_v42, %v327_v19  ;;  %v365_v27 = vmul.f32 0.5, %v364_v20  ;;  %v354_v42 = vmul.f32 %v668_v9, %v353_v31 }
  0xc1   : > { %v493_v29 = vadd.f32 %v910_v44, %v481_v23  ;;  %v480_v30 = vmul.f32 %v472_v22, %v331_v26  ;;  %v375_v36 = vmul.f32 0.5, %v374_v28  ;;  %v476_v41 = vsub.f32 %v450_v32, %v468_v38 }
  0xc2   : > { %v494_v33 = vadd.f32 %v910_v44, %v482_v11  ;;  %v366_v34 = vsub.f32 1.5, %v365_v27  ;;  %v355_v49 = vmul.f32 0.5, %v354_v42  ;;  %vm359_vm3 = vweird.f32 %v668_v9 }
  0xc3   : > { %501 = vst [vmem:[%s939_s22 + $0x10] sm:$0xff] %v493_v29  ;;  %v492_v40 = vadd.f32 %v910_v44, %v480_v30  ;;  %v376_v47 = vsub.f32 1.5, %v375_v36  ;;  %v467_v35 = vmul.f32 %v877_v15, %v861_v6  ;;  %vm360_vm5 = vmor %vm358_vm4, %vm359_vm3  ;;  %vm388_vm7 = vweird.f32 %v958_v25 }
  0xc4   : > { %502 = vst [vmem:[%s939_s22 + $0x18] sm:$0xff] %v494_v33  ;;  %v367_v46 = vmul.f32 %v664_v4, %v366_v34  ;;  %v356_v53 = vsub.f32 1.5, %v355_v49  ;;  %v478_v5 = vsub.f32 %v456_v2, %v470_v1 }
  0xc5   : > { %500 = vst [vmem:[%s939_s22 + $0x8] sm:$0xff] %v492_v40  ;;  %v377_v51 = vmul.f32 %v666_v16, %v376_v47  ;;  %v670_v54 = vpop.eup %669  ;;  %v475_v60 = vsub.f32 %v929_v56, %v467_v35 }
  0xc6   : > { %v371_v3 = vsel %vm370_vm0, %v664_v4, %v367_v46  ;;  %v357_v58 = vmul.f32 %v668_v9, %v356_v53  ;;  %v383_v39 = vmul.f32 %v670_v54, %v958_v25  ;;  %vm389_vm6 = vweird.f32 %v670_v54 }
  0xc7   : > { %v484_v52 = vmul.f32 %v476_v41, %v371_v3  ;;  %v381_v48 = vsel %vm380_vm2, %v666_v16, %v377_v51  ;;  %vm390_vm8 = vmor %vm388_vm7, %vm389_vm6 }
  0xc8   : > { %v485_v57 = vmul.f32 %v477_v0, %v381_v48  ;;  %v361_v62 = vsel %vm360_vm5, %v668_v9, %v357_v58  ;;  %v384_v63 = vmul.f32 %v670_v54, %v383_v39 }
  0xc9   : > { %v496_v55 = vadd.f32 %v910_v44, %v484_v52  ;;  %v483_v6 = vmul.f32 %v475_v60, %v361_v62 }
  0xca   : > { %v497_v61 = vadd.f32 %v910_v44, %v485_v57  ;;  %v385_v59 = vmul.f32 0.5, %v384_v63 }
  0xcb   : > { %504 = vst [vmem:[%s939_s22 + $0x28] sm:$0xff] %v496_v55  ;;  %v495_v50 = vadd.f32 %v910_v44, %v483_v6 }
  0xcc   : > { %505 = vst [vmem:[%s939_s22 + $0x30] sm:$0xff] %v497_v61  ;;  %v386_v56 = vsub.f32 1.5, %v385_v59 }
  0xcd   : > { %503 = vst [vmem:[%s939_s22 + $0x20] sm:$0xff] %v495_v50 }
  0xce   : > { %v387_v4 = vmul.f32 %v670_v54, %v386_v56 }
  0xd0   : > { %v391_v15 = vsel %vm390_vm8, %v670_v54, %v387_v4 }
  0xd1   : > { %v486_v43 = vmul.f32 %v478_v5, %v391_v15 }
  0xd3   : > { %v498_v7 = vadd.f32 %v910_v44, %v486_v43 }
  0xd5   : > { %506 = vst [vmem:[%s939_s22 + $0x38] sm:$0xff] %v498_v7 }
  0xd6   : > { %698 = shalt.err (!%p695_p3)
}
  0xd7   : > { %s735_s12 = smov 128   ;;  %s736_s14 = smov 8  }
  0xd8   : > { %612 = dma.vmem_to_hbm [thread:$0]  (%p800_p5), %s521_s19, 1024, %s523_s30, %s508_s5, %s735_s12, %s735_s12, %s736_s14  }
  0xd9 PF: > { %p618_p4 = scmp.ge.s32.totalorder %s733_s18, 2  ;;  %s537_s20 = sand.u32 1, %s721_s15  }
  0xda   : > { %s538_s22 = scalar_lea.sflag [#allocation3], %s537_s20 }
  0xdb   : > { %p615_p7 = pnand %p618_p4, %p804_p6 }
  0xdd   : > { %p616_p8 = pneg %p615_p7 }
  0xdf   : > { %716 = dma.done.wait (%p616_p8), %s538_s22, 1024  }
  0xe0   : > { %718 = vsyncadd (%p616_p8), %s538_s22, 4294966272  ;;  %p14_p9 = scmp.ge.s32.totalorder %s787_s21, 4   ;;  %s1033_s15 = smov %s725_s16 }
  0xe1   : > { %s1034_s16 = smov %s729_s17  ;;  %s1035_s17 = smov %s798_s24 }
  0xe2   : > { %s1036_s18 = smov %s787_s21  ;;  %16 = sbr.rel (!%p14_p9) target bundleno = 3 (0x3), region = 71 }
  0xe7   :  { %544 = vsyncpa [#allocation3], 1 }
  0xe8   :  { %546 = vsyncpa [#allocation3 + $0x1], 1 }

// kernel: tpu_custom_call.1
= control target key start
LH: loop header
LB: loop body
LE: loop exit
PB: predicated region body
PF: predicated region fallthrough
CT: control target
= control target key end

     0   :  { %9 = vsyncpa [#allocation3], 0  ;;  %s1026_s0 = inlined_call_operand.vmem [shape: f32[128,16], index: 0, kind: input, shape index: {}]   ;;  %s1027_s1 = inlined_call_operand.vmem [shape: f32[16,128], index: 1, kind: input, shape index: {}]   ;;  %s1028_s2 = inlined_call_operand.vmem [shape: f32[1,128], index: 2, kind: input, shape index: {}]   ;;  %s1029_s3 = inlined_call_operand.vmem [shape: f32[1,128], index: 3, kind: input, shape index: {}]   ;;  %s1030_s4 = inlined_call_operand.hbm [shape: f32[128,128], index: 4, kind: output, shape index: {}]  }
   0x1   :  { %11 = vsyncpa [#allocation3 + $0x1], 0  ;;  %s762_s15 = smov 0   ;;  %s764_s16 = smov 0  }
   0x2   :  { %s766_s17 = smov 0   ;;  %s768_s18 = smov 0  }
   0x3 LB: > { %s783_s19 = sadd.s32 4294967295, %s733_s18   ;;  %s585_s20 = sadd.s32 4294967294, %s733_s18   ;;  %s733_s18 = sphi %s768_s18, %s1036_s18   ;;  %s729_s17 = sphi %s766_s17, %s1035_s17   ;;  %s725_s16 = sphi %s764_s16, %s1034_s16   ;;  %s721_s15 = sphi %s762_s15, %s1033_s15  }
   0x4   : > { %s787_s21 = sadd.s32 1, %s733_s18   ;;  %s113_s22 = sadd.s32 1, %s729_s17 }
   0x5   : > { %s110_s23 = ssub.s32 %s733_s18, %s787_s21  ;;  %p123_p0 = scmp.ne.s32.totalorder %s729_s17, %s725_s16 }
   0x6   : > { %p111_p1 = scmp.eq.s32.totalorder %s110_s23, 0  ;;  %p124_p2 = scmp.eq.s32.totalorder %s783_s19, 1 }
   0x7   : > { %p129_p3 = scmp.ne.s32.totalorder %s725_s16, %s721_s15  ;;  %p130_p4 = scmp.eq.s32.totalorder %s585_s20, 1 }
   0x8   : > { %s798_s24 = scalar_select %p111_p1, %s729_s17, %s113_s22  }
   0x9   : > { %p800_p5 = por %p124_p2, %p123_p0  ;;  %p804_p6 = por %p130_p4, %p129_p3 }
   0xa   : > { %p588_p7 = scmp.ge.s32.totalorder %s733_s18, 1  ;;  %p166_p8 = scmp.lt.s32.totalorder %s733_s18, 3 }
   0xc   : > { %p167_p9 = pnand %p588_p7, %p166_p8 }
   0xd   : > { %s590_s5 = sshll.u32 (!%p167_p9), %s783_s19, 3  ;;  %s189_s12 = sand.u32 (!%p167_p9), 1, %s725_s16  }
   0xe   : > { %170 = sbr.rel (%p167_p9) target bundleno = 217 (0xd9), region = 36  ;;  %p193_p10 = scmp.lt.s32.totalorder (!%p167_p9), %s590_s5, 15 }
   0xf   : > { %s589_s20 = sshll.u32 (!%p167_p9), %s189_s12, 6  ;;  %s605_s23 = sshll.u32 (!%p167_p9), %s783_s19, 6 }
  0x10   : > { %s939_s22 = scalar_lea.vmem (!%p167_p9), [#allocation2], %s589_s20  ;;  %s519_s29 = scalar_lea.hbm (!%p167_p9), %s1030_s4, %s605_s23 }
  0x11   : > { %s520_s19 = sshll.u32 (!%p167_p9), %s939_s22, 4  ;;  %s522_s30 = sshll.u32 (!%p167_p9), %s519_s29, 4  ;;  %s521_s19 = int_to_ptr.vmem [resolvable:$true] %s520_s19  ;;  %s523_s30 = int_to_ptr.hbm [resolvable:$true] %s522_s30 }
  0x12   : > { %s691_s10 = scalar_lea.hbm (!%p167_p9), %s1030_s4, 128 }
  0x13   : > { %v393_v0 = vld [vmem:[%s1027_s1 + $0x8] sm:$0xff]  ;;  %v392_v1 = vld [vmem:[%s1027_s1] sm:$0xff]  ;;  %s1038_s5 = smov (!%p193_p10, %s590_s5), 15  ;;  %vm207_vm0 = vcmask 130048  }
  0x14   : > { %432 = vmatpush.msra.mxu0 %v393_v0  ;;  %607 = vmatpush.msra.mxu2 %v393_v0  ;;  %s591_s6 = sshll.u32 %s1038_s5, 3  ;;  %s508_s5 = scalar_lea.sflag [#allocation3], %s189_s12 }
  0x15   : > { %606 = vmatpush.msra.mxu1 %v393_v0  ;;  %608 = vmatpush.msra.mxu3 %v393_v0  ;;  %s196_s9 = scalar_lea.vmem %s1026_s0, %s591_s6  ;;  %s685_s6 = sshra.s32 %s523_s30, 4  ;;  %s686_s6 = int_to_ptr.hbm [resolvable:$true] %s685_s6 }
  0x16   : > { %433 = vmatpush.msra.mxu0 %v392_v1  ;;  %610 = vmatpush.msra.mxu2 %v392_v1  ;;  %v199_v2 = vld [vmem:[%s196_s9] sm:$0xff]  ;;  %v201_v4 = vld [vmem:[%s196_s9 + $0x10] sm:$0xff]  ;;  %v204_v9 = vld [vmem:[%s196_s9 + $0x28] sm:$0xff]  ;;  %s687_s7 = scalar_lea.hbm %s686_s6, 64  ;;  %p692_p0 = scmp.lt.s32.totalorder %s686_s6, %s1030_s4 }
  0x17   : > { %609 = vmatpush.msra.mxu1 %v392_v1  ;;  %611 = vmatpush.msra.mxu3 %v392_v1  ;;  %v203_v3 = vld [vmem:[%s196_s9 + $0x20] sm:$0xff]  ;;  %v214_v6 = vsel %vm207_vm0, %v201_v4, 0.0  ;;  %v208_v7 = vsel %vm207_vm0, %v199_v2, 0.0  ;;  %v205_v8 = vld [vmem:[%s196_s9 + $0x30] sm:$0xff]  ;;  %v202_v10 = vld [vmem:[%s196_s9 + $0x18] sm:$0xff]  ;;  %v223_v12 = vsel %vm207_vm0, %v204_v9, 0.0  ;;  %v232_v16 = vmul.f32 %v199_v2, %v199_v2  ;;  %p688_p11 = scmp.ne.s32.totalorder %s686_s6, %s687_s7  ;;  %p693_p1 = scmp.lt.s32.totalorder %s691_s10, %s687_s7 }
  0x18   : > { %592 = vmatmul.msk.f32.vlgmr.msra.gmra.mxu0 %vm207_vm0, %v199_v2  ;;  %596 = vmatmul.msk.f32.vlgmr.msra.gmra.mxu2 %vm207_vm0, %v203_v3  ;;  %v220_v5 = vsel %vm207_vm0, %v203_v3, 0.0  ;;  %v200_v11 = vld [vmem:[%s196_s9 + $0x8] sm:$0xff]  ;;  %v217_v13 = vsel %vm207_vm0, %v202_v10, 0.0  ;;  %v206_v15 = vld [vmem:[%s196_s9 + $0x38] sm:$0xff]  ;;  %v226_v19 = vsel %vm207_vm0, %v205_v8, 0.0  ;;  %v234_v20 = vmul.f32 %v201_v4, %v201_v4 }
  0x19   : > { %221 = vadd.xlane.f32.xlu2 %v220_v5  ;;  %215 = vadd.xlane.f32.xlu1 %v214_v6  ;;  %v211_v14 = vsel %vm207_vm0, %v200_v11, 0.0  ;;  %v229_v17 = vsel %vm207_vm0, %v206_v15, 0.0  ;;  %v240_v18 = vsel %vm207_vm0, %v232_v16, 0.0  ;;  %v235_v21 = vmul.f32 %v202_v10, %v202_v10  ;;  %p689_p12 = pnand %p688_p11, %p800_p5  ;;  %p694_p2 = por %p693_p1, %p692_p0 }
  0x1a   : > { %209 = vadd.xlane.f32.xlu0 %v208_v7  ;;  %594 = vmatmul.msk.f32.vlgmr.msra.gmra.mxu1 %vm207_vm0, %v201_v4  ;;  %v233_v22 = vmul.f32 %v200_v11, %v200_v11  ;;  %v246_v23 = vsel %vm207_vm0, %v234_v20, 0.0  ;;  %v237_v26 = vmul.f32 %v204_v9, %v204_v9  ;;  %v238_v27 = vmul.f32 %v205_v8, %v205_v8 }
  0x1b   : > { %598 = vmatmul.msk.f32.vlgmr.msra.gmra.mxu3 %vm207_vm0, %v205_v8  ;;  %v249_v24 = vsel %vm207_vm0, %v235_v21, 0.0  ;;  %v236_v28 = vmul.f32 %v203_v3, %v203_v3  ;;  %v239_v32 = vmul.f32 %v206_v15, %v206_v15  ;;  %p690_p13 = pneg %p689_p12 }
  0x1c   : > { %v243_v25 = vsel %vm207_vm0, %v233_v22, 0.0  ;;  %v255_v29 = vsel %vm207_vm0, %v237_v26, 0.0  ;;  %v258_v30 = vsel %vm207_vm0, %v238_v27, 0.0 }
  0x1d   : > { %v252_v31 = vsel %vm207_vm0, %v236_v28, 0.0  ;;  %v261_v33 = vsel %vm207_vm0, %v239_v32, 0.0  ;;  %p695_p3 = pnand %p694_p2, %p690_p13 }
  0x20   : > { %593 = vmatmul.msk.f32.gmra.mxu0 %vm207_vm0, %v200_v11  ;;  %597 = vmatmul.msk.f32.gmra.mxu2 %vm207_vm0, %v204_v9 }
  0x21   : > { %224 = vadd.xlane.f32.xlu2 %v223_v12  ;;  %218 = vadd.xlane.f32.xlu1 %v217_v13 }
  0x22   : > { %212 = vadd.xlane.f32.xlu0 %v211_v14  ;;  %595 = vmatmul.msk.f32.gmra.mxu1 %vm207_vm0, %v202_v10 }
  0x23   : > { %599 = vmatmul.msk.f32.gmra.mxu3 %vm207_vm0, %v206_v15  ;;  %v877_v15 = vld [vmem:[%s1028_s2] ss:$0 sm:$0xff] }
  0x29   : > { %230 = vadd.xlane.f32.xlu1 %v229_v17  ;;  %241 = vadd.xlane.f32.xlu2 %v240_v18 }
  0x2a   : > { %227 = vadd.xlane.f32.xlu0 %v226_v19 }
  0x31   : > { %247 = vadd.xlane.f32.xlu1 %v246_v23  ;;  %250 = vadd.xlane.f32.xlu2 %v249_v24 }
  0x32   : > { %244 = vadd.xlane.f32.xlu0 %v243_v25 }
  0x39   : > { %256 = vadd.xlane.f32.xlu1 %v255_v29  ;;  %259 = vadd.xlane.f32.xlu2 %v258_v30 }
  0x3a   : > { %253 = vadd.xlane.f32.xlu0 %v252_v31 }
  0x42   : > { %262 = vadd.xlane.f32.xlu0 %v261_v33 }
  0x8c   : > { %v222_v34 = vpop.xlane.xlu2 %221  ;;  %v216_v35 = vpop.xlane.xlu1 %215 }
  0x8d   : > { %v210_v36 = vpop.xlane.xlu0 %209  ;;  %v266_v47 = vmul.f32 0.0625, %v216_v35  ;;  %v861_v6 = vmul.f32 0.0625, %v222_v34 }
  0x8e   : > { %v264_v40 = vmul.f32 0.0625, %v210_v36 }
  0x8f   : > { %v282_v52 = vmul.f32 %v266_v47, %v266_v47  ;;  %v284_v21 = vmul.f32 %v861_v6, %v861_v6  ;;  %v888_v30 = vmul.f32 %v877_v15, %v266_v47 }
  0x90   : > { %v280_v43 = vmul.f32 %v264_v40, %v264_v40  ;;  %v463_v27 = vmul.f32 %v877_v15, %v264_v40 }
  0x94   : > { %v225_v37 = vpop.xlane.xlu2 %224  ;;  %v219_v38 = vpop.xlane.xlu1 %218 }
  0x95   : > { %v213_v39 = vpop.xlane.xlu0 %212  ;;  %v846_v48 = vmul.f32 0.0625, %v219_v38  ;;  %v857_v0 = vmul.f32 0.0625, %v225_v37  ;;  %v435_v24 = vpop.f32.mrf.mxu0 }
  0x96   : > { %v848_v50 = vmul.f32 0.0625, %v213_v39  ;;  %v471_v34 = vsub.f32 %v435_v24, %v463_v27 }
  0x97   : > { %v283_v55 = vmul.f32 %v846_v48, %v846_v48  ;;  %v863_v7 = vpop.f32.mrf.mxu1  ;;  %v285_v14 = vmul.f32 %v857_v0, %v857_v0 }
  0x98   : > { %v281_v59 = vmul.f32 %v848_v50, %v848_v50 }
  0x9c   : > { %v844_v41 = vpop.xlane.xlu1 %230  ;;  %v242_v42 = vpop.xlane.xlu2 %241 }
  0x9d   : > { %v272_v44 = vmul.f32 0.0625, %v242_v42  ;;  %v228_v45 = vpop.xlane.xlu0 %227 }
  0x9e   : > { %v859_v3 = vmul.f32 0.0625, %v228_v45  ;;  %v466_v45 = vmul.f32 %v877_v15, %v846_v48  ;;  %v464_v48 = vmul.f32 %v877_v15, %v848_v50 }
  0x9f   : > { %v288_v46 = vsub.f32 %v272_v44, %v280_v43  ;;  %v905_v43 = vmul.f32 0.0625, %v844_v41  ;;  %v910_v44 = vld [vmem:[%s1029_s3] ss:$0 sm:$0xff]  ;;  %v473_v41 = vsub.f32 %v863_v7, %v888_v30 }
  0xa0   : > { %v286_v19 = vmul.f32 %v859_v3, %v859_v3 }
  0xa1   : > { %v296_v49 = vmax.f32 %v288_v46, 0.0 }
  0xa3   : > { %v850_v51 = vadd.f32 1e-05, %v296_v49 }
  0xa4   : > { %v248_v53 = vpop.xlane.xlu1 %247  ;;  %v251_v54 = vpop.xlane.xlu2 %250 }
  0xa5   : > { %655 = vrsqrt.f32 %v850_v51  ;;  %v274_v56 = vmul.f32 0.0625, %v248_v53  ;;  %v275_v57 = vmul.f32 0.0625, %v251_v54  ;;  %v245_v58 = vpop.xlane.xlu0 %244  ;;  %vm318_vm2 = vweird.f32 %v850_v51 }
  0xa6   : > { %v273_v60 = vmul.f32 0.0625, %v245_v58 }
  0xa7   : > { %v290_v61 = vsub.f32 %v274_v56, %v282_v52  ;;  %v291_v62 = vsub.f32 %v275_v57, %v283_v55  ;;  %v929_v56 = vpop.f32.mrf.mxu2 }
  0xa8   : > { %v289_v63 = vsub.f32 %v273_v60, %v281_v59 }
  0xa9   : > { %v298_v1 = vmax.f32 %v290_v61, 0.0  ;;  %v299_v2 = vmax.f32 %v291_v62, 0.0  ;;  %v287_v61 = vmul.f32 %v905_v43, %v905_v43 }
  0xaa   : > { %v297_v4 = vmax.f32 %v289_v63, 0.0 }
  0xab   : > { %v656_v5 = vpop.eup %655  ;;  %v865_v8 = vadd.f32 1e-05, %v298_v1  ;;  %v867_v9 = vadd.f32 1e-05, %v299_v2 }
  0xac   : > { %v313_v10 = vmul.f32 %v656_v5, %v850_v51  ;;  %v870_v11 = vadd.f32 1e-05, %v297_v4  ;;  %v257_v12 = vpop.xlane.xlu1 %256  ;;  %v260_v13 = vpop.xlane.xlu2 %259  ;;  %vm319_vm1 = vweird.f32 %v656_v5 }
  0xad   : > { %657 = vrsqrt.f32 %v865_v8  ;;  %v277_v16 = vmul.f32 0.0625, %v257_v12  ;;  %v254_v17 = vpop.xlane.xlu0 %253  ;;  %v278_v20 = vmul.f32 0.0625, %v260_v13  ;;  %vm320_vm3 = vmor %vm318_vm2, %vm319_vm1  ;;  %v444_v51 = vpop.f32.mrf.mxu1  ;;  %vm338_vm5 = vweird.f32 %v865_v8 }
  0xae   : > { %v314_v18 = vmul.f32 %v656_v5, %v313_v10  ;;  %659 = vrsqrt.f32 %v867_v9  ;;  %v276_v23 = vmul.f32 0.0625, %v254_v17  ;;  %v474_v63 = vsub.f32 %v444_v51, %v466_v45  ;;  %v438_v10 = vpop.f32.mrf.mxu0  ;;  %v453_v45 = vpop.f32.mrf.mxu3 }
  0xaf   : > { %661 = vrsqrt.f32 %v870_v11  ;;  %v293_v22 = vsub.f32 %v277_v16, %v285_v14  ;;  %v294_v26 = vsub.f32 %v278_v20, %v286_v19  ;;  %vm348_vm9 = vweird.f32 %v867_v9 }
  0xb0   : > { %v315_v25 = vmul.f32 0.5, %v314_v18  ;;  %v292_v29 = vsub.f32 %v276_v23, %v284_v21  ;;  %vm328_vm10 = vweird.f32 %v870_v11 }
  0xb1   : > { %v301_v28 = vmax.f32 %v293_v22, 0.0  ;;  %v302_v32 = vmax.f32 %v294_v26, 0.0  ;;  %v472_v22 = vsub.f32 %v438_v10, %v464_v48 }
  0xb2   : > { %v316_v31 = vsub.f32 1.5, %v315_v25  ;;  %v300_v40 = vmax.f32 %v292_v29, 0.0 }
  0xb3   : > { %v891_v33 = vpop.eup %657  ;;  %v894_v35 = vadd.f32 1e-05, %v301_v28  ;;  %v900_v39 = vadd.f32 1e-05, %v302_v32  ;;  %v450_v32 = vpop.f32.mrf.mxu2 }
  0xb4   : > { %v896_v36 = vpop.eup %659  ;;  %v317_v37 = vmul.f32 %v656_v5, %v316_v31  ;;  %v333_v38 = vmul.f32 %v891_v33, %v865_v8  ;;  %v932_v59 = vadd.f32 1e-05, %v300_v40  ;;  %vm339_vm4 = vweird.f32 %v891_v33 }
  0xb5   : > { %v902_v42 = vpop.eup %661  ;;  %v343_v46 = vmul.f32 %v896_v36, %v867_v9  ;;  %663 = vrsqrt.f32 %v894_v35  ;;  %v263_v47 = vpop.xlane.xlu0 %262  ;;  %vm349_vm6 = vweird.f32 %v896_v36  ;;  %vm340_vm8 = vmor %vm338_vm5, %vm339_vm4  ;;  %vm368_vm14 = vweird.f32 %v894_v35 }
  0xb6   : > { %v321_v49 = vsel %vm320_vm3, %v656_v5, %v317_v37  ;;  %v334_v52 = vmul.f32 %v891_v33, %v333_v38  ;;  %v323_v53 = vmul.f32 %v902_v42, %v870_v11  ;;  %665 = vrsqrt.f32 %v900_v39  ;;  %vm350_vm11 = vmor %vm348_vm9, %vm349_vm6 }
  0xb7   : > { %v479_v54 = vmul.f32 %v471_v34, %v321_v49  ;;  %v344_v55 = vmul.f32 %v896_v36, %v343_v46  ;;  %v279_v60 = vmul.f32 0.0625, %v263_v47  ;;  %667 = vrsqrt.f32 %v932_v59 }
  0xb8   : > { %v335_v57 = vmul.f32 0.5, %v334_v52  ;;  %v324_v58 = vmul.f32 %v902_v42, %v323_v53  ;;  %vm329_vm7 = vweird.f32 %v902_v42  ;;  %v469_v37 = vmul.f32 %v877_v15, %v859_v3 }
  0xb9   : > { %v491_v62 = vadd.f32 %v910_v44, %v479_v54  ;;  %v345_v1 = vmul.f32 0.5, %v344_v55  ;;  %v295_v7 = vsub.f32 %v279_v60, %v287_v61  ;;  %vm330_vm12 = vmor %vm328_vm10, %vm329_vm7  ;;  %v468_v38 = vmul.f32 %v877_v15, %v857_v0 }
  0xba   : > { %v336_v50 = vsub.f32 1.5, %v335_v57  ;;  %v325_v2 = vmul.f32 0.5, %v324_v58  ;;  %vm378_vm1 = vweird.f32 %v900_v39  ;;  %v477_v0 = vsub.f32 %v453_v45, %v469_v37 }
  0xbb   : > { %v664_v4 = vpop.eup %663  ;;  %499 = vst [vmem:[%s939_s22] sm:$0xff] %v491_v62  ;;  %v346_v5 = vsub.f32 1.5, %v345_v1  ;;  %v303_v8 = vmax.f32 %v295_v7, 0.0  ;;  %vm358_vm4 = vweird.f32 %v932_v59  ;;  %v470_v1 = vmul.f32 %v877_v15, %v905_v43 }
  0xbc   : > { %v337_v12 = vmul.f32 %v891_v33, %v336_v50  ;;  %v326_v13 = vsub.f32 1.5, %v325_v2  ;;  %v363_v14 = vmul.f32 %v664_v4, %v894_v35  ;;  %v666_v16 = vpop.eup %665  ;;  %vm369_vm13 = vweird.f32 %v664_v4  ;;  %v456_v2 = vpop.f32.mrf.mxu3 }
  0xbd   : > { %v347_v17 = vmul.f32 %v896_v36, %v346_v5  ;;  %v373_v21 = vmul.f32 %v666_v16, %v900_v39  ;;  %v958_v25 = vadd.f32 1e-05, %v303_v8  ;;  %v668_v9 = vpop.eup %667  ;;  %vm379_vm15 = vweird.f32 %v666_v16  ;;  %vm370_vm0 = vmor %vm368_vm14, %vm369_vm13 }
  0xbe   : > { %v341_v18 = vsel %vm340_vm8, %v891_v33, %v337_v12  ;;  %v327_v19 = vmul.f32 %v902_v42, %v326_v13  ;;  %v364_v20 = vmul.f32 %v664_v4, %v363_v14  ;;  %v353_v31 = vmul.f32 %v668_v9, %v932_v59  ;;  %vm380_vm2 = vmor %vm378_vm1, %vm379_vm15 }
  0xbf   : > { %v481_v23 = vmul.f32 %v473_v41, %v341_v18  ;;  %v351_v24 = vsel %vm350_vm11, %v896_v36, %v347_v17  ;;  %v374_v28 = vmul.f32 %v666_v16, %v373_v21  ;;  %669 = vrsqrt.f32 %v958_v25 }
  0xc0   : > { %v482_v11 = vmul.f32 %v474_v63, %v351_v24  ;;  %v331_v26 = vsel %vm330_vm12, %v902_v42, %v327_v19  ;;  %v365_v27 = vmul.f32 0.5, %v364_v20  ;;  %v354_v42 = vmul.f32 %v668_v9, %v353_v31 }
  0xc1   : > { %v493_v29 = vadd.f32 %v910_v44, %v481_v23  ;;  %v480_v30 = vmul.f32 %v472_v22, %v331_v26  ;;  %v375_v36 = vmul.f32 0.5, %v374_v28  ;;  %v476_v41 = vsub.f32 %v450_v32, %v468_v38 }
  0xc2   : > { %v494_v33 = vadd.f32 %v910_v44, %v482_v11  ;;  %v366_v34 = vsub.f32 1.5, %v365_v27  ;;  %v355_v49 = vmul.f32 0.5, %v354_v42  ;;  %vm359_vm3 = vweird.f32 %v668_v9 }
  0xc3   : > { %501 = vst [vmem:[%s939_s22 + $0x10] sm:$0xff] %v493_v29  ;;  %v492_v40 = vadd.f32 %v910_v44, %v480_v30  ;;  %v376_v47 = vsub.f32 1.5, %v375_v36  ;;  %v467_v35 = vmul.f32 %v877_v15, %v861_v6  ;;  %vm360_vm5 = vmor %vm358_vm4, %vm359_vm3  ;;  %vm388_vm7 = vweird.f32 %v958_v25 }
  0xc4   : > { %502 = vst [vmem:[%s939_s22 + $0x18] sm:$0xff] %v494_v33  ;;  %v367_v46 = vmul.f32 %v664_v4, %v366_v34  ;;  %v356_v53 = vsub.f32 1.5, %v355_v49  ;;  %v478_v5 = vsub.f32 %v456_v2, %v470_v1 }
  0xc5   : > { %500 = vst [vmem:[%s939_s22 + $0x8] sm:$0xff] %v492_v40  ;;  %v377_v51 = vmul.f32 %v666_v16, %v376_v47  ;;  %v670_v54 = vpop.eup %669  ;;  %v475_v60 = vsub.f32 %v929_v56, %v467_v35 }
  0xc6   : > { %v371_v3 = vsel %vm370_vm0, %v664_v4, %v367_v46  ;;  %v357_v58 = vmul.f32 %v668_v9, %v356_v53  ;;  %v383_v39 = vmul.f32 %v670_v54, %v958_v25  ;;  %vm389_vm6 = vweird.f32 %v670_v54 }
  0xc7   : > { %v484_v52 = vmul.f32 %v476_v41, %v371_v3  ;;  %v381_v48 = vsel %vm380_vm2, %v666_v16, %v377_v51  ;;  %vm390_vm8 = vmor %vm388_vm7, %vm389_vm6 }
  0xc8   : > { %v485_v57 = vmul.f32 %v477_v0, %v381_v48  ;;  %v361_v62 = vsel %vm360_vm5, %v668_v9, %v357_v58  ;;  %v384_v63 = vmul.f32 %v670_v54, %v383_v39 }
  0xc9   : > { %v496_v55 = vadd.f32 %v910_v44, %v484_v52  ;;  %v483_v6 = vmul.f32 %v475_v60, %v361_v62 }
  0xca   : > { %v497_v61 = vadd.f32 %v910_v44, %v485_v57  ;;  %v385_v59 = vmul.f32 0.5, %v384_v63 }
  0xcb   : > { %504 = vst [vmem:[%s939_s22 + $0x28] sm:$0xff] %v496_v55  ;;  %v495_v50 = vadd.f32 %v910_v44, %v483_v6 }
  0xcc   : > { %505 = vst [vmem:[%s939_s22 + $0x30] sm:$0xff] %v497_v61  ;;  %v386_v56 = vsub.f32 1.5, %v385_v59 }
  0xcd   : > { %503 = vst [vmem:[%s939_s22 + $0x20] sm:$0xff] %v495_v50 }
  0xce   : > { %v387_v4 = vmul.f32 %v670_v54, %v386_v56 }
  0xd0   : > { %v391_v15 = vsel %vm390_vm8, %v670_v54, %v387_v4 }
  0xd1   : > { %v486_v43 = vmul.f32 %v478_v5, %v391_v15 }
  0xd3   : > { %v498_v7 = vadd.f32 %v910_v44, %v486_v43 }
  0xd5   : > { %506 = vst [vmem:[%s939_s22 + $0x38] sm:$0xff] %v498_v7 }
  0xd6   : > { %698 = shalt.err (!%p695_p3)
}
  0xd7   : > { %s735_s12 = smov 128   ;;  %s736_s14 = smov 8  }
  0xd8   : > { %612 = dma.vmem_to_hbm [thread:$0]  (%p800_p5), %s521_s19, 1024, %s523_s30, %s508_s5, %s735_s12, %s735_s12, %s736_s14  }
  0xd9 PF: > { %p618_p4 = scmp.ge.s32.totalorder %s733_s18, 2  ;;  %s537_s20 = sand.u32 1, %s721_s15  }
  0xda   : > { %s538_s22 = scalar_lea.sflag [#allocation3], %s537_s20 }
  0xdb   : > { %p615_p7 = pnand %p618_p4, %p804_p6 }
  0xdd   : > { %p616_p8 = pneg %p615_p7 }
  0xdf   : > { %716 = dma.done.wait (%p616_p8), %s538_s22, 1024  }
  0xe0   : > { %718 = vsyncadd (%p616_p8), %s538_s22, 4294966272  ;;  %p14_p9 = scmp.ge.s32.totalorder %s787_s21, 4   ;;  %s1033_s15 = smov %s725_s16 }
  0xe1   : > { %s1034_s16 = smov %s729_s17  ;;  %s1035_s17 = smov %s798_s24 }
  0xe2   : > { %s1036_s18 = smov %s787_s21  ;;  %16 = sbr.rel (!%p14_p9) target bundleno = 3 (0x3), region = 71 }
  0xe7   :  { %544 = vsyncpa [#allocation3], 1 }
  0xe8   :  { %546 = vsyncpa [#allocation3 + $0x1], 1 }

</bundles_post_ra>
